<compile_context>
chip_gen: v6e
topology: v6e:2x2x1
jax: 0.10.0
libtpu: 0.0.40
codegen_flags: <defaults>
</compile_context>

<pallas_src>
import functools

import numpy as np
import jax
import jax.numpy as jnp
from jax.experimental import pallas as pl
from jax.experimental.pallas import tpu as pltpu

_MB = 1024 * 1024


def _spa_kernel(x_ref, ac_ref, up_ref, w1_ref, b1_ref, w2_ref, o_ref):
    Bblk, C, HW = x_ref.shape

    x = x_ref[...]                                   # (Bblk, C, HW) f32
    x2d = x.reshape(Bblk * C, HW)                    # merge leading dims (free)

    # Fused multi-scale adaptive average pooling (+ pyramid weights): one
    # canonical matmul against the pre-transposed (HW, 16) operator.
    # bf16 operands, f32 accumulation.
    y = jnp.dot(x2d.astype(jnp.bfloat16), ac_ref[...],
                preferred_element_type=jnp.float32)              # (Bblk*C, 16)

    # Conv2d(C, Cmid, 1) with folded eval-mode BatchNorm as ONE block-diagonal
    # matmul, then bias + ReLU in f32.
    # TODO(synk): training-mode BN (batch statistics) is not implemented;
    # only eval-mode (running stats) semantics are folded into w1/b1.
    h = jnp.dot(w1_ref[...], y,
                preferred_element_type=jnp.float32)              # (Bblk*Cmid, 16)
    h = jnp.maximum(h + b1_ref[...], 0.0)

    # Conv2d(Cmid, C, 1) as one block-diagonal matmul -> sigmoid gate (f32).
    z = jnp.dot(w2_ref[...], h,
                preferred_element_type=jnp.float32)              # (Bblk*C, 16)
    gate = jax.nn.sigmoid(z)

    # Nearest upsample 4x4 -> HxW as a lane-dense bf16 matmul, then gate x (f32).
    gate_full = jnp.dot(gate.astype(jnp.bfloat16), up_ref[...],
                        preferred_element_type=jnp.float32)      # (Bblk*C, HW)
    o_ref[...] = (x2d * gate_full).reshape(Bblk, C, HW)


@functools.lru_cache(maxsize=8)
def _build_operators_np(H, W):
    """Pooling (pre-transposed, (HW,16)) and nearest-upsample ((16,HW)) operators."""
    assert H % 4 == 0 and W % 4 == 0, "SPALayer Pallas kernel needs H, W divisible by 4"
    HW = H * W
    r4 = np.arange(H) * 4 // H          # adaptive-pool bin (output size 4)
    c4 = np.arange(W) * 4 // W
    r2 = np.arange(H) * 2 // H          # adaptive-pool bin (output size 2)
    c2 = np.arange(W) * 2 // W

    A4 = np.zeros((HW, 16), np.float32)             # pool -> 4x4
    A2 = np.zeros((HW, 16), np.float32)             # pool -> 2x2, nearest-up to 4x4
    A1 = np.full((HW, 16), 1.0 / HW, np.float32)    # pool -> 1x1, broadcast to 4x4
    U = np.zeros((16, HW), np.float32)              # nearest-up 4x4 -> HxW
    n4 = (H // 4) * (W // 4)
    n2 = (H // 2) * (W // 2)
    for h in range(H):
        for w in range(W):
            p = h * W + w
            A4[p, r4[h] * 4 + c4[w]] = 1.0 / n4
            for i in range(4):
                for j in range(4):
                    if r2[h] == i // 2 and c2[w] == j // 2:
                        A2[p, i * 4 + j] = 1.0 / n2
            U[r4[h] * 4 + c4[w], p] = 1.0           # src = floor(dst*4/H) == r4/c4
    return A4, A2, A1, U


def _vmem_capacity_bytes():
    """Best-effort per-core VMEM capacity; conservative fallback works on all chips."""
    try:
        info = pltpu.get_tpu_info()
        cap = getattr(info, "vmem_capacity_bytes", None)
        if cap:
            return int(cap)
    except Exception:
        pass
    return 64 * _MB          # smallest per-core VMEM (v7x); v5e/v6e have 128 MiB


def _pick_bblk(B, C, HW, Cmid, block_budget_bytes):
    """Images per grid step.

    Temp-aware: ~7 live block-sized buffers (x + out double-buffered, bf16 copy,
    gate_full, gated product). Also bounded so the block-diagonal conv matmuls
    stay small relative to the pooling matmul / HBM time. Prefers a divisor of B
    (no padding); otherwise the wrapper pads the batch.
    """
    img_bytes = C * HW * 4
    cap_vmem = max(1, block_budget_bytes // (7 * img_bytes))
    cap_conv = max(8, HW // max(1, Cmid))
    bblk = max(1, min(B, cap_vmem, cap_conv, 64))
    if bblk >= B and B >= 8:
        bblk = (B + 1) // 2          # keep >= 2 grid steps for v7x megacore sharding
    for d in range(bblk, max(1, bblk // 2) - 1, -1):
        if B % d == 0:
            return d, 0
    pad = (-B) % bblk
    return bblk, pad


def spa_layer(x, w1, w2, gamma, beta, rmean, rvar, spa_w):
    B, C, H, W = x.shape
    Cmid = w1.shape[0]
    HW = H * W

    A4, A2, A1, U = _build_operators_np(H, W)
    spa_w = spa_w.reshape(3)
    # Fuse the 3 pooling operators + pyramid weights into one (HW, 16) bf16 operand.
    a_comb = (spa_w[0] * A4 + spa_w[1] * A2 + spa_w[2] * A1).astype(jnp.bfloat16)
    up_op = jnp.asarray(U, dtype=jnp.bfloat16)

    # Fold eval-mode BatchNorm into the first 1x1 conv.
    scale = gamma * jax.lax.rsqrt(rvar + 1e-5)
    w1f = w1 * scale[:, None]                        # (Cmid, C)
    b1 = beta - scale * rmean                        # (Cmid,)

    vmem_cap = _vmem_capacity_bytes()
    block_budget = max(16 * _MB, min(int(0.35 * vmem_cap), 40 * _MB))
    vmem_limit = max(32 * _MB, min(int(0.72 * vmem_cap), 100 * _MB))

    bblk, pad = _pick_bblk(B, C, HW, Cmid, block_budget)
    Bp = B + pad

    # Block-diagonal conv weights: ONE 2-D matmul per conv per grid step.
    eye = jnp.eye(bblk, dtype=jnp.float32)
    w1bd = jnp.kron(eye, w1f)                                    # (bblk*Cmid, bblk*C)
    w2bd = jnp.kron(eye, w2)                                     # (bblk*C, bblk*Cmid)
    b1bd = jnp.tile(b1, (bblk,)).reshape(bblk * Cmid, 1)         # (bblk*Cmid, 1)

    x_flat = x.reshape(B, C, HW)
    if pad:
        x_flat = jnp.pad(x_flat, ((0, pad), (0, 0), (0, 0)))

    grid = (Bp // bblk,)

    out = pl.pallas_call(
        _spa_kernel,
        out_shape=jax.ShapeDtypeStruct((Bp, C, HW), jnp.float32),
        grid=grid,
        in_specs=[
            pl.BlockSpec((bblk, C, HW), lambda i: (i, 0, 0)),          # x
            pl.BlockSpec((HW, 16), lambda i: (0, 0)),                  # fused pooling op
            pl.BlockSpec((16, HW), lambda i: (0, 0)),                  # nearest-upsample op
            pl.BlockSpec((bblk * Cmid, bblk * C), lambda i: (0, 0)),   # conv1 (BN folded)
            pl.BlockSpec((bblk * Cmid, 1), lambda i: (0, 0)),          # folded BN bias
            pl.BlockSpec((bblk * C, bblk * Cmid), lambda i: (0, 0)),   # conv2
        ],
        out_specs=pl.BlockSpec((bblk, C, HW), lambda i: (i, 0, 0)),
        compiler_params=pltpu.CompilerParams(
            dimension_semantics=("parallel",),
            vmem_limit_bytes=vmem_limit),
        cost_estimate=pl.CostEstimate(
            flops=4 * Bp * C * 16 * (HW + bblk * Cmid),
            transcendentals=Bp * C * 16,
            bytes_accessed=2 * Bp * C * HW * 4),
    )(x_flat, a_comb, up_op, w1bd, b1bd, w2bd)

    if pad:
        out = out[:B]
    return out.reshape(B, C, H, W)


def spa_ref(x, w1, w2, gamma, beta, rmean, rvar, spa_w):
    """Pure-JAX reference mirroring the PyTorch forward (eval-mode BN, unfused)."""
    B, C, H, W = x.shape

    def pool(o):
        return x.reshape(B, C, o, H // o, o, W // o).mean(axis=(3, 5))

    y4, y2, y1 = pool(4), pool(2), pool(1)
    y2u = jnp.repeat(jnp.repeat(y2, 2, axis=2), 2, axis=3)
    y1u = jnp.broadcast_to(y1, (B, C, 4, 4))
    y = spa_w[0] * y4 + spa_w[1] * y2u + spa_w[2] * y1u
    h = jnp.einsum('mc,bcij->bmij', w1, y)
    inv = jax.lax.rsqrt(rvar + 1e-5)
    h = (h - rmean[None, :, None, None]) * (inv * gamma)[None, :, None, None] \
        + beta[None, :, None, None]
    h = jnp.maximum(h, 0.0)
    gate = jax.nn.sigmoid(jnp.einsum('cm,bmij->bcij', w2, h))
    gate_full = jnp.repeat(jnp.repeat(gate, H // 4, axis=2), W // 4, axis=3)
    return x * gate_full


if __name__ == "__main__":
    B, C, H, W = 2, 32, 16, 16
    reduction = 16
    Cmid = C // reduction

    key = jax.random.PRNGKey(0)
    kx, k1, k2 = jax.random.split(key, 3)
    x = jax.random.normal(kx, (B, C, H, W), jnp.float32)

    # deterministic parameter init (shapes per SPALayer.__init__)
    w1 = jax.random.normal(k1, (Cmid, C), jnp.float32) / np.sqrt(C)      # Conv2d(C, C//r, 1)
    w2 = jax.random.normal(k2, (C, Cmid), jnp.float32) / np.sqrt(Cmid)   # Conv2d(C//r, C, 1)
    gamma = jnp.ones((Cmid,), jnp.float32)
    beta = jnp.zeros((Cmid,), jnp.float32)
    rmean = jnp.zeros((Cmid,), jnp.float32)
    rvar = jnp.ones((Cmid,), jnp.float32)
    spa_w = jnp.ones((3,), jnp.float32)          # Parameter(torch.ones(1,3,1,1,1))

    out = spa_layer(x, w1, w2, gamma, beta, rmean, rvar, spa_w)
    out = jax.block_until_ready(out)

    ref = spa_ref(x, w1, w2, gamma, beta, rmean, rvar, spa_w)
    np.testing.assert_allclose(np.asarray(out), np.asarray(ref), rtol=2e-2, atol=2e-2)

    print("KERNEL_OK")
</pallas_src>

<mosaic_0001>
module attributes {stable_mosaic.version = 11 : i64} {
  func.func @_spa_kernel(%arg0: i32, %arg1: memref<2x32x256xf32, #tpu.memory_space<vmem>>, %arg2: memref<256x16xbf16, #tpu.memory_space<vmem>>, %arg3: memref<16x256xbf16, #tpu.memory_space<vmem>>, %arg4: memref<4x64xf32, #tpu.memory_space<vmem>>, %arg5: memref<4x1xf32, #tpu.memory_space<vmem>>, %arg6: memref<64x4xf32, #tpu.memory_space<vmem>>, %arg7: memref<2x32x256xf32, #tpu.memory_space<vmem>>) attributes {dimension_semantics = [#tpu.dimension_semantics<parallel>], iteration_bounds = array<i64: 1>, scalar_prefetch = 0 : i64, scratch_operands = 0 : i64, tpu.core_type = #tpu.core_type<tc>, window_params = [{transform_indices = @transform_0, window_bounds = array<i64: 2, 32, 256>}, {pipeline_mode = #tpu.pipeline_mode<synchronous>, transform_indices = @transform_1, window_bounds = array<i64: 256, 16>}, {pipeline_mode = #tpu.pipeline_mode<synchronous>, transform_indices = @transform_2, window_bounds = array<i64: 16, 256>}, {pipeline_mode = #tpu.pipeline_mode<synchronous>, transform_indices = @transform_3, window_bounds = array<i64: 4, 64>}, {pipeline_mode = #tpu.pipeline_mode<synchronous>, transform_indices = @transform_4, window_bounds = array<i64: 4, 1>}, {pipeline_mode = #tpu.pipeline_mode<synchronous>, transform_indices = @transform_5, window_bounds = array<i64: 64, 4>}, {transform_indices = @transform_6, window_bounds = array<i64: 2, 32, 256>}]} {
    %c0 = arith.constant 0 : index
    %c0_0 = arith.constant 0 : index
    %c0_1 = arith.constant 0 : index
    %0 = vector.load %arg1[%c0, %c0_0, %c0_1] : memref<2x32x256xf32, #tpu.memory_space<vmem>>, vector<2x32x256xf32>
    %1 = vector.shape_cast %0 : vector<2x32x256xf32> to vector<64x256xf32>
    %2 = arith.truncf %1 : vector<64x256xf32> to vector<64x256xbf16>
    %c0_2 = arith.constant 0 : index
    %c0_3 = arith.constant 0 : index
    %3 = vector.load %arg2[%c0_2, %c0_3] : memref<256x16xbf16, #tpu.memory_space<vmem>>, vector<256x16xbf16>
    %cst = arith.constant dense<0.000000e+00> : vector<64x16xf32>
    %4 = tpu.matmul %2, %3, %cst {dimension_numbers = #tpu.dot_dimension_numbers<[1], [0], [0], [1], [0, 0, 1, 1], [], []>} : vector<64x256xbf16>, vector<256x16xbf16>, vector<64x16xf32> -> vector<64x16xf32>
    %c0_4 = arith.constant 0 : index
    %c0_5 = arith.constant 0 : index
    %5 = vector.load %arg4[%c0_4, %c0_5] : memref<4x64xf32, #tpu.memory_space<vmem>>, vector<4x64xf32>
    %cst_6 = arith.constant dense<0.000000e+00> : vector<4x16xf32>
    %6 = tpu.matmul %5, %4, %cst_6 {dimension_numbers = #tpu.dot_dimension_numbers<[1], [0], [0], [1], [0, 0, 1, 1], [], []>} : vector<4x64xf32>, vector<64x16xf32>, vector<4x16xf32> -> vector<4x16xf32>
    %c0_7 = arith.constant 0 : index
    %c0_8 = arith.constant 0 : index
    %7 = vector.load %arg5[%c0_7, %c0_8] : memref<4x1xf32, #tpu.memory_space<vmem>>, vector<4x1xf32>
    %8 = vector.broadcast %7 : vector<4x1xf32> to vector<4x16xf32>
    %9 = arith.addf %6, %8 : vector<4x16xf32>
    %cst_9 = arith.constant 0.000000e+00 : f32
    %10 = vector.broadcast %cst_9 : f32 to vector<4x16xf32>
    %11 = arith.maximumf %9, %10 : vector<4x16xf32>
    %c0_10 = arith.constant 0 : index
    %c0_11 = arith.constant 0 : index
    %12 = vector.load %arg6[%c0_10, %c0_11] : memref<64x4xf32, #tpu.memory_space<vmem>>, vector<64x4xf32>
    %cst_12 = arith.constant dense<0.000000e+00> : vector<64x16xf32>
    %13 = tpu.matmul %12, %11, %cst_12 {dimension_numbers = #tpu.dot_dimension_numbers<[1], [0], [0], [1], [0, 0, 1, 1], [], []>} : vector<64x4xf32>, vector<4x16xf32>, vector<64x16xf32> -> vector<64x16xf32>
    %14 = arith.negf %13 : vector<64x16xf32>
    %15 = math.exp %14 : vector<64x16xf32>
    %cst_13 = arith.constant 1.000000e+00 : f32
    %16 = vector.broadcast %cst_13 : f32 to vector<64x16xf32>
    %17 = arith.addf %16, %15 : vector<64x16xf32>
    %18 = arith.divf %16, %17 : vector<64x16xf32>
    %19 = arith.truncf %18 : vector<64x16xf32> to vector<64x16xbf16>
    %c0_14 = arith.constant 0 : index
    %c0_15 = arith.constant 0 : index
    %20 = vector.load %arg3[%c0_14, %c0_15] : memref<16x256xbf16, #tpu.memory_space<vmem>>, vector<16x256xbf16>
    %cst_16 = arith.constant dense<0.000000e+00> : vector<64x256xf32>
    %21 = tpu.matmul %19, %20, %cst_16 {dimension_numbers = #tpu.dot_dimension_numbers<[1], [0], [0], [1], [0, 0, 1, 1], [], []>} : vector<64x16xbf16>, vector<16x256xbf16>, vector<64x256xf32> -> vector<64x256xf32>
    %22 = arith.mulf %1, %21 : vector<64x256xf32>
    %23 = vector.shape_cast %22 : vector<64x256xf32> to vector<2x32x256xf32>
    %c0_17 = arith.constant 0 : index
    %c0_18 = arith.constant 0 : index
    %c0_19 = arith.constant 0 : index
    %24 = vector.load %arg7[%c0_17, %c0_18, %c0_19] : memref<2x32x256xf32, #tpu.memory_space<vmem>>, vector<2x32x256xf32>
    tpu.vector_store %arg7[%c0_17, %c0_18, %c0_19], %23 {strides = array<i32>} : memref<2x32x256xf32, #tpu.memory_space<vmem>>, vector<2x32x256xf32>,
    return
  }
  func.func @transform_0(%arg0: i32) -> (i32, i32, i32) {
    %c0_i32 = arith.constant 0 : i32
    %c0_i32_0 = arith.constant 0 : i32
    %c0_i32_1 = arith.constant 0 : i32
    return %arg0, %c0_i32, %c0_i32_0 : i32, i32, i32
  }
  func.func @transform_1(%arg0: i32) -> (i32, i32) {
    %c0_i32 = arith.constant 0 : i32
    %c0_i32_0 = arith.constant 0 : i32
    %c0_i32_1 = arith.constant 0 : i32
    return %c0_i32, %c0_i32_0 : i32, i32
  }
  func.func @transform_2(%arg0: i32) -> (i32, i32) {
    %c0_i32 = arith.constant 0 : i32
    %c0_i32_0 = arith.constant 0 : i32
    %c0_i32_1 = arith.constant 0 : i32
    return %c0_i32, %c0_i32_0 : i32, i32
  }
  func.func @transform_3(%arg0: i32) -> (i32, i32) {
    %c0_i32 = arith.constant 0 : i32
    %c0_i32_0 = arith.constant 0 : i32
    %c0_i32_1 = arith.constant 0 : i32
    return %c0_i32, %c0_i32_0 : i32, i32
  }
  func.func @transform_4(%arg0: i32) -> (i32, i32) {
    %c0_i32 = arith.constant 0 : i32
    %c0_i32_0 = arith.constant 0 : i32
    %c0_i32_1 = arith.constant 0 : i32
    return %c0_i32, %c0_i32_0 : i32, i32
  }
  func.func @transform_5(%arg0: i32) -> (i32, i32) {
    %c0_i32 = arith.constant 0 : i32
    %c0_i32_0 = arith.constant 0 : i32
    %c0_i32_1 = arith.constant 0 : i32
    return %c0_i32, %c0_i32_0 : i32, i32
  }
  func.func @transform_6(%arg0: i32) -> (i32, i32, i32) {
    %c0_i32 = arith.constant 0 : i32
    %c0_i32_0 = arith.constant 0 : i32
    %c0_i32_1 = arith.constant 0 : i32
    return %arg0, %c0_i32, %c0_i32_0 : i32, i32, i32
  }
}

</mosaic_0001>

<bundles_post_ra>
// kernel: tpu_custom_call.1
= control target key start
LH: loop header
LB: loop body
LE: loop exit
PB: predicated region body
PF: predicated region fallthrough
CT: control target
= control target key end

     0   :  { %s1132_s0 = inlined_call_operand.vmem [shape: f32[2,32,256], index: 0, kind: input, shape index: {}]   ;;  %s1133_s1 = inlined_call_operand.vmem [shape: bf16[256,16], index: 1, kind: input, shape index: {}]   ;;  %s1134_s2 = inlined_call_operand.vmem [shape: bf16[16,256], index: 2, kind: input, shape index: {}]   ;;  %s1135_s3 = inlined_call_operand.vmem [shape: f32[4,64], index: 3, kind: input, shape index: {}]   ;;  %s1136_s4 = inlined_call_operand.vmem [shape: f32[4,1], index: 4, kind: input, shape index: {}]   ;;  %s1137_s5 = inlined_call_operand.vmem [shape: f32[64,4], index: 5, kind: input, shape index: {}]   ;;  %s1138_s6 = inlined_call_operand.hbm [shape: f32[2,32,256], index: 6, kind: output, shape index: {}]  }
   0x1   :  { %v802_v0 = vld [vmem:[%s1133_s1 + $0x78] sm:$0xff]   ;;  %v804_v2 = vld [vmem:[%s1133_s1 + $0x70] sm:$0xff]   ;;  %v806_v4 = vld [vmem:[%s1133_s1 + $0x68] sm:$0xff]  }
   0x2   :  { %v803_v1 = vld [vmem:[%s1133_s1 + $0x38] sm:$0xff]   ;;  %704 = vmatprep.subr.bf16.mxu0 %v802_v0  ;;  %v805_v3 = vld [vmem:[%s1133_s1 + $0x30] sm:$0xff]   ;;  %v807_v5 = vld [vmem:[%s1133_s1 + $0x28] sm:$0xff]  }
   0x3   :  { %705 = vmatpush3.bf16.msra.mxu0 %v803_v1  ;;  %v808_v6 = vld [vmem:[%s1133_s1 + $0x60] sm:$0xff]   ;;  %v810_v8 = vld [vmem:[%s1133_s1 + $0x58] sm:$0xff]   ;;  %v812_v10 = vld [vmem:[%s1133_s1 + $0x50] sm:$0xff]  }
   0x4   :  { %706 = vmatprep.subr.bf16.mxu0 %v804_v2  ;;  %v809_v7 = vld [vmem:[%s1133_s1 + $0x20] sm:$0xff]   ;;  %v811_v9 = vld [vmem:[%s1133_s1 + $0x18] sm:$0xff]   ;;  %v952_v11 = vld [vmem:[%s1132_s0 + $0x8] sm:$0xff] }
   0x5   :  { %v957_v12 = vld [vmem:[%s1132_s0 + $0x18] sm:$0xff]  ;;  %v813_v14 = vld [vmem:[%s1133_s1 + $0x10] sm:$0xff]   ;;  %v814_v15 = vld [vmem:[%s1133_s1 + $0x48] sm:$0xff]  }
   0x6   :  { %v42_v13 = vpack.c.bf16 %v957_v12, %v952_v11 }
   0x7   :  { %707 = vmatpush3.bf16.msra.mxu0 %v805_v3 }
   0x8   :  { %708 = vmatprep.subr.bf16.mxu0 %v806_v4  ;;  %209 = vmatprep.mubr.bf16.mxu0 %v42_v13 }
   0xb   :  { %709 = vmatpush3.bf16.msra.mxu0 %v807_v5 }
   0xc   :  { %710 = vmatprep.subr.bf16.mxu0 %v808_v6 }
   0xf   :  { %711 = vmatpush3.bf16.msra.mxu0 %v809_v7 }
  0x10   :  { %712 = vmatprep.subr.bf16.mxu0 %v810_v8 }
  0x13   :  { %713 = vmatpush3.bf16.msra.mxu0 %v811_v9 }
  0x14   :  { %714 = vmatprep.subr.bf16.mxu0 %v812_v10 }
  0x15   :  { %11 = vsyncpa [#allocation3], 0  ;;  %v815_v16 = vld [vmem:[%s1133_s1 + $0x8] sm:$0xff]   ;;  %v816_v17 = vld [vmem:[%s1133_s1 + $0x40] sm:$0xff]   ;;  %v875_v40 = vmov 0.0   ;;  %vm876_vm0 = vmmov 0  }
  0x16   :  { %v817_v18 = vld [vmem:[%s1133_s1] sm:$0xff]   ;;  %v984_v20 = vld [vmem:[%s1132_s0 + $0x10] sm:$0xff]  ;;  %v989_v21 = vld [vmem:[%s1132_s0 + $0x28] sm:$0xff]  ;;  %762 = vmatprep.subr.mxu1 %v875_v40  ;;  %778 = vmatprep.mubr.msk.f32.mxu1 %vm876_vm0, %v875_v40  ;;  %v877_v42 = vmov 0   ;;  %vm249_vm1 = vcmask 523264   ;;  %vm332_vm2 = vcmask 31744  }
  0x17   :  { %715 = vmatpush3.bf16.msra.mxu0 %v813_v14  ;;  %v979_v19 = vld [vmem:[%s1132_s0] sm:$0xff]  ;;  %v994_v22 = vld [vmem:[%s1132_s0 + $0x38] sm:$0xff]  ;;  %v1008_v26 = vld [vmem:[%s1132_s0 + $0x30] sm:$0xff]  ;;  %801 = vset.pattern.permute.xlu0 %v877_v42  ;;  %vm357_vm3 = vcmask 1043456   ;;  %vm530_vm4 = vcmask 130048  }
  0x18   :  { %716 = vmatprep.subr.bf16.mxu0 %v814_v15  ;;  %v41_v23 = vpack.c.bf16 %v984_v20, %v979_v19  ;;  %v44_v24 = vpack.c.bf16 %v994_v22, %v989_v21  ;;  %v1003_v25 = vld [vmem:[%s1132_s0 + $0x20] sm:$0xff]  ;;  %v1013_v27 = vld [vmem:[%s1132_s0 + $0x48] sm:$0xff]  ;;  %v1018_v28 = vld [vmem:[%s1132_s0 + $0x58] sm:$0xff] }
  0x19   :  { %v43_v29 = vpack.c.bf16 %v1008_v26, %v1003_v25  ;;  %v46_v30 = vpack.c.bf16 %v1018_v28, %v1013_v27  ;;  %v1027_v31 = vld [vmem:[%s1132_s0 + $0x40] sm:$0xff]  ;;  %v1032_v32 = vld [vmem:[%s1132_s0 + $0x50] sm:$0xff]  ;;  %v1037_v33 = vld [vmem:[%s1132_s0 + $0x68] sm:$0xff] }
  0x1a   :  { %v1042_v34 = vld [vmem:[%s1132_s0 + $0x78] sm:$0xff]  ;;  %v45_v35 = vpack.c.bf16 %v1032_v32, %v1027_v31  ;;  %v1051_v37 = vld [vmem:[%s1132_s0 + $0x60] sm:$0xff]  ;;  %v1056_v38 = vld [vmem:[%s1132_s0 + $0x70] sm:$0xff] }
  0x1b   :  { %717 = vmatpush3.bf16.msra.mxu0 %v815_v16  ;;  %v48_v36 = vpack.c.bf16 %v1042_v34, %v1037_v33  ;;  %v47_v39 = vpack.c.bf16 %v1056_v38, %v1051_v37  ;;  %v243_v41 = vld [vmem:[%s1136_s4] sm:$0xf]  ;;  %v325_v10 = vld [vmem:[%s1137_s5 + $0x8] sm:$0xff]  ;;  %v326_v13 = vld [vmem:[%s1137_s5 + $0x10] sm:$0xff] }
  0x1c   :  { %718 = vmatprep.subr.bf16.mxu0 %v816_v17  ;;  %246 = vperm.xlu0 %801, %v243_v41   ;;  %v242_v3 = vld [vmem:[%s1135_s3] sm:$0xf]  ;;  %v327_v14 = vld [vmem:[%s1137_s5 + $0x18] sm:$0xff]  ;;  %v329_v16 = vld [vmem:[%s1137_s5 + $0x28] sm:$0xff] }
  0x1d   :  { %v324_v4 = vld [vmem:[%s1137_s5] sm:$0xff]  ;;  %v330_v17 = vld [vmem:[%s1137_s5 + $0x30] sm:$0xff] }
  0x1e   :  { %v328_v15 = vld [vmem:[%s1137_s5 + $0x20] sm:$0xff] }
  0x1f   :  { %719 = vmatpush3.bf16.msra.mxu0 %v817_v18  ;;  %v331_v18 = vld [vmem:[%s1137_s5 + $0x38] sm:$0xff] }
  0x22   :  { %210 = vmatmul.mubr.bf16.vlgmr.msra.gmra.mxu0 %v41_v23  ;;  %v818_v23 = vld [vmem:[%s1134_s2] ss:$8 sps:$4 sm:$0xff]  }
  0x23   :  { %217 = vmatprep.mubr.bf16.mxu0 %v44_v24  ;;  %v820_v24 = vld [vmem:[%s1134_s2 + $0x4] ss:$8 sps:$4 sm:$0xff]   ;;  %s878_s2 = smov [#allocation2]  }
  0x24   :  { %s653_s5 = sshll.u32 %s878_s2, 4  ;;  %s654_s5 = int_to_ptr.vmem [resolvable:$true] %s653_s5 }
  0x25   :  { %s853_s8 = scalar_lea.vmem %s654_s5, 2048  ;;  %p858_p1 = scmp.lt.s32.totalorder %s654_s5, %s654_s5 }
  0x26   :  { %p854_p0 = scmp.ne.s32.totalorder %s654_s5, %s853_s8  ;;  %p859_p2 = scmp.lt.s32.totalorder %s853_s8, %s853_s8 }
  0x28   :  { %p860_p3 = por %p859_p2, %p858_p1 }
  0x2a   :  { %218 = vmatmul.mubr.bf16.gmra.mxu0 %v43_v29  ;;  %p861_p4 = pnand %p860_p3, %p854_p0 }
  0x2b   :  { %225 = vmatprep.mubr.bf16.mxu0 %v46_v30 }
  0x32   :  { %226 = vmatmul.mubr.bf16.gmra.mxu0 %v45_v35 }
  0x33   :  { %233 = vmatprep.mubr.bf16.mxu0 %v48_v36 }
  0x3a   :  { %234 = vmatmul.mubr.bf16.gmra.mxu0 %v47_v39 }
  0x97   :  { %v247_v5 = vpop.permute.xlu0 %246 }
  0xe2   :  { %v720_v43 = vpop.f32.mrf.mxu0 }
  0xe4   :  { %v721_v44 = vpop.f32.mrf.mxu0 }
  0xe5   :  { %v722_v2 = vadd.f32 %v721_v44, %v720_v43 }
  0xe6   :  { %v723_v45 = vpop.f32.mrf.mxu0 }
  0xe8   :  { %v724_v46 = vpop.f32.mrf.mxu0 }
  0xe9   :  { %v725_v1 = vadd.f32 %v724_v46, %v723_v45 }
  0xea   :  { %v726_v47 = vpop.f32.mrf.mxu0 }
  0xec   :  { %v727_v48 = vpop.f32.mrf.mxu0 }
  0xed   :  { %v728_v0 = vadd.f32 %v727_v48, %v726_v47 }
  0xee   :  { %v729_v49 = vpop.f32.mrf.mxu0 }
  0xf0   :  { %v730_v50 = vpop.f32.mrf.mxu0 }
  0xf1   :  { %v731_v63 = vadd.f32 %v730_v50, %v729_v49 }
  0xf2   :  { %v732_v51 = vpop.f32.mrf.mxu0 }
  0xf4   :  { %v733_v52 = vpop.f32.mrf.mxu0 }
  0xf5   :  { %v734_v62 = vadd.f32 %v733_v52, %v732_v51 }
  0xf6   :  { %v735_v53 = vpop.f32.mrf.mxu0 }
  0xf8   :  { %v736_v54 = vpop.f32.mrf.mxu0 }
  0xf9   :  { %v737_v61 = vadd.f32 %v736_v54, %v735_v53 }
  0xfa   :  { %v738_v55 = vpop.f32.mrf.mxu0 }
  0xfc   :  { %v739_v56 = vpop.f32.mrf.mxu0 }
  0xfd   :  { %v740_v60 = vadd.f32 %v739_v56, %v738_v55 }
  0xfe   :  { %v741_v57 = vpop.f32.mrf.mxu0 }
 0x100   :  { %v742_v58 = vpop.f32.mrf.mxu0 }
 0x101   :  { %v743_v59 = vadd.f32 %v742_v58, %v741_v57 }
 0x103   :  { %763 = vmatpush3.msra.mxu1 %v743_v59 }
 0x104   :  { %764 = vmatprep.subr.mxu1 %v875_v40 }
 0x105   :  { %765 = vmatpush3.msra.mxu1 %v740_v60 }
 0x106   :  { %766 = vmatprep.subr.mxu1 %v875_v40 }
 0x107   :  { %767 = vmatpush3.msra.mxu1 %v737_v61 }
 0x108   :  { %768 = vmatprep.subr.mxu1 %v875_v40 }
 0x109   :  { %769 = vmatpush3.msra.mxu1 %v734_v62 }
 0x10a   :  { %770 = vmatprep.subr.mxu1 %v875_v40 }
 0x10b   :  { %771 = vmatpush3.msra.mxu1 %v731_v63 }
 0x10c   :  { %772 = vmatprep.subr.mxu1 %v875_v40 }
 0x10d   :  { %773 = vmatpush3.msra.mxu1 %v728_v0 }
 0x10e   :  { %774 = vmatprep.subr.mxu1 %v875_v40 }
 0x10f   :  { %775 = vmatpush3.msra.mxu1 %v725_v1 }
 0x110   :  { %776 = vmatprep.subr.mxu1 %v875_v40 }
 0x111   :  { %777 = vmatpush3.msra.mxu1 %v722_v2 }
 0x112   :  { %779 = vmatmul.mubr.msk.f32.vlgmr.msra.gmra.mxu1 %vm249_vm1, %v242_v3 }
 0x113   :  { %783 = vmatprep.mubr.msk.f32.mxu1 %vm332_vm2, %v324_v4 }
 0x1d2   :  { %v319_v6 = vpop.f32.mrf.mxu1 }
 0x1d3   :  { %v320_v7 = vadd.f32 %v319_v6, %v247_v5 }
 0x1d4   :  { %v780_v8 = vpop.f32.mrf.mxu1 }
 0x1d5   :  { %v323_v9 = vmax.f32 %v320_v7, 0.0 }
 0x1d7   :  { %781 = vmatprep.subr.msk.mxu1 %vm357_vm3, %v323_v9 }
 0x1d8   :  { %782 = vmatpush3.msk.msra.mxu1 %vm357_vm3, %v323_v9 }
 0x1d9   :  { %784 = vmatmul.mubr.msk.f32.vlgmr.msra.gmra.mxu1 %vm332_vm2, %v325_v10  ;;  %557 = vmatprep.subr.bf16.mxu1 %v820_v24 }
 0x1da   :  { %786 = vmatprep.mubr.msk.f32.mxu1 %vm332_vm2, %v326_v13  ;;  %558 = vmatpush1.bf16.msra.mxu1 %v818_v23 }
 0x1dd   :  { %787 = vmatmul.mubr.msk.f32.gmra.mxu1 %vm332_vm2, %v327_v14 }
 0x1de   :  { %789 = vmatprep.mubr.msk.f32.mxu1 %vm332_vm2, %v328_v15 }
 0x1e1   :  { %790 = vmatmul.mubr.msk.f32.gmra.mxu1 %vm332_vm2, %v329_v16 }
 0x1e2   :  { %792 = vmatprep.mubr.msk.f32.mxu1 %vm332_vm2, %v330_v17 }
 0x1e5   :  { %793 = vmatmul.mubr.msk.f32.gmra.mxu1 %vm332_vm2, %v331_v18 }
 0x1e6   :  { %575 = vmatprep.mubr.bf16.mxu1 %v877_v42 }
 0x299   :  { %v785_v29 = vpop.f32.mrf.mxu1 }
 0x29a   :  { %v691_v30 = vmul.f32 -1.442695, %v785_v29 }
 0x29b   :  { %v427_v35 = vpop.f32.mrf.mxu1 }
 0x29c   :  { %821 = vpow2.f32 %v691_v30  ;;  %v690_v36 = vmul.f32 -1.442695, %v427_v35 }
 0x29d   :  { %v788_v39 = vpop.f32.mrf.mxu1 }
 0x29e   :  { %823 = vpow2.f32 %v690_v36  ;;  %v693_v40 = vmul.f32 -1.442695, %v788_v39 }
 0x29f   :  { %v437_v41 = vpop.f32.mrf.mxu1 }
 0x2a0   :  { %825 = vpow2.f32 %v693_v40  ;;  %v692_v43 = vmul.f32 -1.442695, %v437_v41 }
 0x2a1   :  { %v791_v44 = vpop.f32.mrf.mxu1 }
 0x2a2   :  { %827 = vpow2.f32 %v692_v43  ;;  %v695_v45 = vmul.f32 -1.442695, %v791_v44 }
 0x2a3   :  { %v447_v46 = vpop.f32.mrf.mxu1 }
 0x2a4   :  { %v694_v47 = vmul.f32 -1.442695, %v447_v46  ;;  %829 = vpow2.f32 %v695_v45 }
 0x2a5   :  { %v794_v48 = vpop.f32.mrf.mxu1 }
 0x2a6   :  { %831 = vpow2.f32 %v694_v47  ;;  %v697_v53 = vmul.f32 -1.442695, %v794_v48 }
 0x2a7   :  { %v457_v50 = vpop.f32.mrf.mxu1 }
 0x2a8   :  { %v696_v55 = vmul.f32 -1.442695, %v457_v50 }
 0x2a9   :  { %v822_v49 = vpop.eup %821 }
 0x2aa   :  { %v491_v51 = vadd.f32 1.0, %v822_v49 }
 0x2ab   :  { %v824_v52 = vpop.eup %823 }
 0x2ac   :  { %v490_v54 = vadd.f32 1.0, %v824_v52  ;;  %833 = vrcp.f32 %v491_v51 }
 0x2ad   :  { %v826_v56 = vpop.eup %825 }
 0x2ae   :  { %835 = vrcp.f32 %v490_v54  ;;  %v493_v58 = vadd.f32 1.0, %v826_v56 }
 0x2af   :  { %v828_v57 = vpop.eup %827  ;;  %837 = vpow2.f32 %v697_v53 }
 0x2b0   :  { %v492_v59 = vadd.f32 1.0, %v828_v57  ;;  %839 = vpow2.f32 %v696_v55 }
 0x2b1   :  { %841 = vrcp.f32 %v493_v58  ;;  %v830_v60 = vpop.eup %829 }
 0x2b2   :  { %843 = vrcp.f32 %v492_v59  ;;  %v495_v62 = vadd.f32 1.0, %v830_v60 }
 0x2b3   :  { %v832_v61 = vpop.eup %831 }
 0x2b4   :  { %v494_v63 = vadd.f32 1.0, %v832_v61  ;;  %845 = vrcp.f32 %v495_v62 }
 0x2b6   :  { %847 = vrcp.f32 %v494_v63 }
 0x2b9   :  { %v834_v0 = vpop.eup %833 }
 0x2bb   :  { %v836_v1 = vpop.eup %835 }
 0x2bc   :  { %v838_v2 = vpop.eup %837  ;;  %v514_v3 = vpack.c.bf16 %v834_v0, %v836_v1 }
 0x2bd   :  { %v840_v4 = vpop.eup %839  ;;  %v497_v5 = vadd.f32 1.0, %v838_v2 }
 0x2be   :  { %700 = vmatmul.mubr.msk.bf16.vlgmr.msra.gmra.mxu1 %vm530_vm4, %v514_v3  ;;  %v842_v6 = vpop.eup %841  ;;  %v496_v7 = vadd.f32 1.0, %v840_v4 }
 0x2bf   :  { %585 = vmatprep.mubr.bf16.mxu1 %v877_v42  ;;  %v844_v8 = vpop.eup %843  ;;  %849 = vrcp.f32 %v497_v5 }
 0x2c0   :  { %851 = vrcp.f32 %v496_v7  ;;  %v515_v9 = vpack.c.bf16 %v842_v6, %v844_v8 }
 0x2c1   :  { %v846_v10 = vpop.eup %845 }
 0x2c3   :  { %v848_v13 = vpop.eup %847 }
 0x2c4   :  { %v516_v14 = vpack.c.bf16 %v846_v10, %v848_v13 }
 0x2c6   :  { %701 = vmatmul.mubr.msk.bf16.gmra.mxu1 %vm530_vm4, %v515_v9 }
 0x2c7   :  { %595 = vmatprep.mubr.bf16.mxu1 %v877_v42 }
 0x2cc   :  { %v850_v15 = vpop.eup %849 }
 0x2cd   :  { %v852_v16 = vpop.eup %851 }
 0x2ce   :  { %702 = vmatmul.mubr.msk.bf16.gmra.mxu1 %vm530_vm4, %v516_v14  ;;  %v517_v17 = vpack.c.bf16 %v850_v15, %v852_v16 }
 0x2cf   :  { %605 = vmatprep.mubr.bf16.mxu1 %v877_v42 }
 0x2d6   :  { %703 = vmatmul.mubr.msk.bf16.gmra.mxu1 %vm530_vm4, %v517_v17 }
 0x37e   :  { %v577_v18 = vpop.f32.mrf.mxu1 }
 0x37f   :  { %v616_v23 = vmul.f32 %v577_v18, %v979_v19 }
 0x380   :  { %v579_v24 = vpop.f32.mrf.mxu1 }
 0x381   :  { %632 = vst [vmem:[#allocation2] sm:$0xff] %v616_v23  ;;  %v617_v29 = vmul.f32 %v579_v24, %v952_v11 }
 0x382   :  { %v581_v30 = vpop.f32.mrf.mxu1 }
 0x383   :  { %633 = vst [vmem:[#allocation2 + $0x8] sm:$0xff] %v617_v29  ;;  %v618_v35 = vmul.f32 %v581_v30, %v984_v20 }
 0x384   :  { %v583_v36 = vpop.f32.mrf.mxu1 }
 0x385   :  { %634 = vst [vmem:[#allocation2 + $0x10] sm:$0xff] %v618_v35  ;;  %v619_v42 = vmul.f32 %v583_v36, %v957_v12 }
 0x386   :  { %v587_v39 = vpop.f32.mrf.mxu1 }
 0x387   :  { %635 = vst [vmem:[#allocation2 + $0x18] sm:$0xff] %v619_v42  ;;  %v620_v40 = vmul.f32 %v587_v39, %v1003_v25 }
 0x388   :  { %v589_v41 = vpop.f32.mrf.mxu1 }
 0x389   :  { %636 = vst [vmem:[#allocation2 + $0x20] sm:$0xff] %v620_v40  ;;  %v621_v19 = vmul.f32 %v589_v41, %v989_v21 }
 0x38a   :  { %v591_v43 = vpop.f32.mrf.mxu1 }
 0x38b   :  { %637 = vst [vmem:[#allocation2 + $0x28] sm:$0xff] %v621_v19  ;;  %v622_v11 = vmul.f32 %v591_v43, %v1008_v26 }
 0x38c   :  { %v593_v44 = vpop.f32.mrf.mxu1 }
 0x38d   :  { %638 = vst [vmem:[#allocation2 + $0x30] sm:$0xff] %v622_v11  ;;  %v623_v20 = vmul.f32 %v593_v44, %v994_v22 }
 0x38e   :  { %v597_v45 = vpop.f32.mrf.mxu1 }
 0x38f   :  { %639 = vst [vmem:[#allocation2 + $0x38] sm:$0xff] %v623_v20  ;;  %v624_v12 = vmul.f32 %v597_v45, %v1027_v31 }
 0x390   :  { %v599_v46 = vpop.f32.mrf.mxu1 }
 0x391   :  { %640 = vst [vmem:[#allocation2 + $0x40] sm:$0xff] %v624_v12  ;;  %v625_v25 = vmul.f32 %v599_v46, %v1013_v27 }
 0x392   :  { %v601_v47 = vpop.f32.mrf.mxu1 }
 0x393   :  { %641 = vst [vmem:[#allocation2 + $0x48] sm:$0xff] %v625_v25  ;;  %v626_v21 = vmul.f32 %v601_v47, %v1032_v32 }
 0x394   :  { %v603_v48 = vpop.f32.mrf.mxu1 }
 0x395   :  { %642 = vst [vmem:[#allocation2 + $0x50] sm:$0xff] %v626_v21  ;;  %v627_v26 = vmul.f32 %v603_v48, %v1018_v28 }
 0x396   :  { %v607_v49 = vpop.f32.mrf.mxu1 }
 0x397   :  { %643 = vst [vmem:[#allocation2 + $0x58] sm:$0xff] %v627_v26  ;;  %v628_v22 = vmul.f32 %v607_v49, %v1051_v37 }
 0x398   :  { %v609_v50 = vpop.f32.mrf.mxu1 }
 0x399   :  { %644 = vst [vmem:[#allocation2 + $0x60] sm:$0xff] %v628_v22  ;;  %v629_v31 = vmul.f32 %v609_v50, %v1037_v33 }
 0x39a   :  { %v611_v51 = vpop.f32.mrf.mxu1 }
 0x39b   :  { %645 = vst [vmem:[#allocation2 + $0x68] sm:$0xff] %v629_v31  ;;  %v630_v27 = vmul.f32 %v611_v51, %v1056_v38 }
 0x39c   :  { %v613_v52 = vpop.f32.mrf.mxu1 }
 0x39d   :  { %646 = vst [vmem:[#allocation2 + $0x70] sm:$0xff] %v630_v27  ;;  %v631_v32 = vmul.f32 %v613_v52, %v1042_v34 }
 0x39f   :  { %647 = vst [vmem:[#allocation2 + $0x78] sm:$0xff] %v631_v32 }
 0x3a0   :  { %864 = shalt.err (!%p861_p4)
}
 0x3a1   :  { %s879_s9 = smov 256   ;;  %s880_s10 = smov 16  }
 0x3a2   :  { %659 = dma.vmem_to_hbm [thread:$0]  %s654_s5, 2048, %s1138_s6, [#allocation3], %s879_s9, %s879_s9, %s880_s10  }
 0x3a3   :  { %873 = dma.done.wait [#allocation3], 2048  }
 0x3a4   :  { %874 = vsyncadd [#allocation3], 4294965248 }
 0x3a5   :  { %663 = vsyncpa [#allocation3], 1 }

</bundles_post_ra>
